<compile_context>
chip_gen: v7x
topology: tpu7x:2x2x1
jax: 0.10.0
libtpu: 0.0.40
codegen_flags: <defaults>
</compile_context>

<pallas_src>
import functools

import jax
import jax.numpy as jnp
from jax import lax
from jax.experimental import pallas as pl
from jax.experimental.pallas import tpu as pltpu

ALPHA = 0.25
GAMMA = 2
LANES = 128
MAX_BLOCK_ROWS = 8192          # (8192,128) f32 = 4 MiB per input block
NUM_SPLITS = 2                 # leading "parallel" axis (2 TCs on v7x)
VMEM_LIMIT_BYTES = 32 * 1024 * 1024


def _cdiv(a, b):
    return -(-a // b)


def _round_up(x, m):
    return _cdiv(x, m) * m


def _sublane(dtype):
    # Minimum sublane multiple for the BlockSpec: 8 for 32-bit, 16 for 16-bit,
    # 32 for 8-bit / bool packed dtypes.
    return max(8, 32 // max(1, jnp.dtype(dtype).itemsize))


def _focal_loss_kernel(pred_ref, true_ref, out_ref, *, alpha, gamma,
                       rows, block_rows, steps, ragged):
    c = pl.program_id(0)
    i = pl.program_id(1)

    @pl.when(i == 0)
    def _():
        out_ref[...] = jnp.zeros_like(out_ref)

    x = pred_ref[...].astype(jnp.float32)
    t = true_ref[...].astype(jnp.float32)

    # Stable formulation, 3 transcendentals / element (exp, log1p, exp):
    #   log(p)   = log(sigmoid(x))  = min(x, 0) - log1p(exp(-|x|))
    #   log(1-p) = log(p) - x                          (log-odds identity)
    #   p        = exp(log(p)),   1-p = 1 - p
    e = jnp.exp(-jnp.abs(x))
    log_p = jnp.minimum(x, 0.0) - jnp.log1p(e)
    log_q = log_p - x
    p = jnp.exp(log_p)
    q = 1.0 - p

    if gamma == 2:                       # plain multiplies, no extra EUP work
        pg, qg = p * p, q * q
    elif float(gamma).is_integer():
        g = int(gamma)
        pg, qg = p ** g, q ** g
    else:                                # reuse logs: only 2 extra EUP ops
        pg = jnp.exp(gamma * log_p)
        qg = jnp.exp(gamma * log_q)

    fl = (-alpha * t * log_p * qg
          - (1.0 - alpha) * (1.0 - t) * log_q * pg)

    def _accum(vals):
        # Fold the (block_rows, 128) block into a single-vreg (8, 128) partial
        # sum; the resident output block accumulates across the i axis.
        out_ref[...] += jnp.sum(vals.reshape(block_rows // 8, 8, LANES), axis=0)

    if not ragged:
        _accum(fl)
    else:
        block_start = (c * steps + i) * block_rows
        full = block_start + block_rows <= rows

        @pl.when(full)
        def _():
            _accum(fl)

        @pl.when(jnp.logical_not(full))
        def _():
            # Tail (or fully out-of-range) block: zero rows >= `rows`.  The
            # select also squashes any undefined values Pallas padded in.
            row_ids = lax.broadcasted_iota(jnp.int32, (block_rows, LANES), 0)
            _accum(jnp.where(block_start + row_ids < rows, fl, 0.0))


def focal_loss(y_pred, y_true, alpha=ALPHA, gamma=GAMMA):
    """Sum-reduced sigmoid focal loss.  y_pred are logits.  Returns scalar f32."""
    assert y_pred.shape == y_true.shape
    n = y_pred.size
    if n == 0:
        return jnp.float32(0.0)

    pred = y_pred.reshape(-1)
    true = y_true.reshape(-1)

    # Only when numel is not a multiple of 128: tiny (<128 elem) pad with
    # self-cancelling values (pred=+40, true=1 -> focal term exactly 0).
    # The bulk path streams zero-copy views; the ragged *row* tail is masked
    # in-kernel instead of being padded in HBM.
    if n % LANES != 0:
        pad = LANES - n % LANES
        pred = jnp.pad(pred, (0, pad), constant_values=40.0)
        true = jnp.pad(true, (0, pad), constant_values=1)
    rows = pred.size // LANES
    pred2d = pred.reshape(rows, LANES)
    true2d = true.reshape(rows, LANES)

    sub = max(_sublane(pred2d.dtype), _sublane(true2d.dtype))
    block_rows = min(MAX_BLOCK_ROWS, _round_up(rows, sub))
    total_blocks = _cdiv(rows, block_rows)
    num_splits = NUM_SPLITS if total_blocks >= NUM_SPLITS else 1
    steps = _cdiv(total_blocks, num_splits)
    ragged = (num_splits * steps * block_rows != rows)
    last_block = total_blocks - 1

    kernel = functools.partial(
        _focal_loss_kernel, alpha=alpha, gamma=gamma,
        rows=rows, block_rows=block_rows, steps=steps, ragged=ragged)

    # Clamp: the (at most num_splits-1) excess grid steps re-fetch the last
    # real block; the in-kernel mask zeroes their contribution.
    in_blk = pl.BlockSpec(
        (block_rows, LANES),
        lambda c, i: (jnp.minimum(c * steps + i, last_block), 0))

    cost = pl.CostEstimate(
        flops=20 * n,
        transcendentals=3 * n,
        bytes_accessed=(n * (pred2d.dtype.itemsize + true2d.dtype.itemsize)
                        + num_splits * 8 * LANES * 4))

    partial = pl.pallas_call(
        kernel,
        out_shape=jax.ShapeDtypeStruct((num_splits * 8, LANES), jnp.float32),
        grid_spec=pltpu.PrefetchScalarGridSpec(
            num_scalar_prefetch=0,
            grid=(num_splits, steps),
            in_specs=[in_blk, in_blk],
            out_specs=pl.BlockSpec((8, LANES), lambda c, i: (c, 0)),
        ),
        compiler_params=pltpu.CompilerParams(
            # TODO(synk): on v7x verify the Mosaic dump shards this leading
            # axis across both TensorCores; if not, switch to CORE_PARALLEL.
            dimension_semantics=("parallel", "arbitrary"),
            vmem_limit_bytes=VMEM_LIMIT_BYTES),
        cost_estimate=cost,
    )(pred2d, true2d)

    # Tiny final reduce of the per-core (8,128) partial sums.
    return jnp.sum(partial)


def _focal_loss_ref(y_pred, y_true, alpha=ALPHA, gamma=GAMMA):
    p = jax.nn.sigmoid(y_pred.astype(jnp.float32))
    t = y_true.astype(jnp.float32)
    fl = (-alpha * t * jnp.log(p) * (1.0 - p) ** gamma
          - (1.0 - alpha) * (1.0 - t) * jnp.log(1.0 - p) * p ** gamma)
    return jnp.sum(fl)


if __name__ == "__main__":
    key = jax.random.PRNGKey(0)
    k1, k2, k3, k4 = jax.random.split(key, 4)

    # Detection-style prediction map (numel % 128 == 0 -> fully zero-copy path).
    B, C, H, W = 2, 4, 16, 16
    y_pred = jax.random.normal(k1, (B, C, H, W), dtype=jnp.float32)
    y_true = (jax.random.uniform(k2, (B, C, H, W)) > 0.5).astype(jnp.float32)
    loss = jax.block_until_ready(focal_loss(y_pred, y_true))
    ref = jax.block_until_ready(_focal_loss_ref(y_pred, y_true))
    assert jnp.allclose(loss, ref, rtol=1e-5, atol=1e-5), (loss, ref)

    # Ragged shape (numel not a multiple of 128): exercises the tiny lane pad
    # and the in-kernel row-tail masking path.
    shape2 = (3, 5, 7, 11)
    y_pred2 = jax.random.normal(k3, shape2, dtype=jnp.float32)
    y_true2 = (jax.random.uniform(k4, shape2) > 0.5).astype(jnp.float32)
    loss2 = jax.block_until_ready(focal_loss(y_pred2, y_true2))
    ref2 = jax.block_until_ready(_focal_loss_ref(y_pred2, y_true2))
    assert jnp.allclose(loss2, ref2, rtol=1e-5, atol=1e-5), (loss2, ref2)

    print("KERNEL_OK")
</pallas_src>

<mosaic_0001>
module attributes {stable_mosaic.version = 11 : i64} {
  func.func @_focal_loss_kernel(%arg0: i32, %arg1: i32, %arg2: memref<16x128xf32, #tpu.memory_space<vmem>>, %arg3: memref<16x128xf32, #tpu.memory_space<vmem>>, %arg4: memref<8x128xf32, #tpu.memory_space<vmem>>) attributes {dimension_semantics = [#tpu.dimension_semantics<parallel>, #tpu.dimension_semantics<arbitrary>], iteration_bounds = array<i64: 1, 1>, scalar_prefetch = 0 : i64, scratch_operands = 0 : i64, tpu.core_type = #tpu.core_type<tc>, window_params = [{transform_indices = @transform_0, window_bounds = array<i64: 16, 128>}, {transform_indices = @transform_1, window_bounds = array<i64: 16, 128>}, {transform_indices = @transform_2, window_bounds = array<i64: 8, 128>}]} {
    %c0_i32 = arith.constant 0 : i32
    %0 = arith.cmpi eq, %arg1, %c0_i32 : i32
    %1 = arith.extui %0 : i1 to i32
    %c0_i32_0 = arith.constant 0 : i32
    %2 = arith.cmpi ne, %1, %c0_i32_0 : i32
    scf.if %2 {
      %cst_14 = arith.constant 0.000000e+00 : f32
      %35 = vector.broadcast %cst_14 : f32 to vector<8x128xf32>
      %c0_15 = arith.constant 0 : index
      %c0_16 = arith.constant 0 : index
      %36 = vector.load %arg4[%c0_15, %c0_16] : memref<8x128xf32, #tpu.memory_space<vmem>>, vector<8x128xf32>
      tpu.vector_store %arg4[%c0_15, %c0_16], %35 {strides = array<i32>} : memref<8x128xf32, #tpu.memory_space<vmem>>, vector<8x128xf32>,
    } else {
    }
    %c0 = arith.constant 0 : index
    %c0_1 = arith.constant 0 : index
    %3 = vector.load %arg2[%c0, %c0_1] : memref<16x128xf32, #tpu.memory_space<vmem>>, vector<16x128xf32>
    %c0_2 = arith.constant 0 : index
    %c0_3 = arith.constant 0 : index
    %4 = vector.load %arg3[%c0_2, %c0_3] : memref<16x128xf32, #tpu.memory_space<vmem>>, vector<16x128xf32>
    %5 = math.absf %3 : vector<16x128xf32>
    %cst = arith.constant 0.000000e+00 : f32
    %6 = vector.broadcast %cst : f32 to vector<16x128xf32>
    %7 = arith.subf %6, %5 : vector<16x128xf32>
    %8 = math.exp %7 : vector<16x128xf32>
    %cst_4 = arith.constant 0.000000e+00 : f32
    %9 = vector.broadcast %cst_4 : f32 to vector<16x128xf32>
    %10 = arith.minimumf %3, %9 : vector<16x128xf32>
    %11 = math.log1p %8 : vector<16x128xf32>
    %12 = arith.subf %10, %11 : vector<16x128xf32>
    %13 = arith.subf %12, %3 : vector<16x128xf32>
    %14 = math.exp %12 : vector<16x128xf32>
    %cst_5 = arith.constant 1.000000e+00 : f32
    %15 = vector.broadcast %cst_5 : f32 to vector<16x128xf32>
    %16 = arith.subf %15, %14 : vector<16x128xf32>
    %17 = arith.mulf %14, %14 : vector<16x128xf32>
    %18 = arith.mulf %16, %16 : vector<16x128xf32>
    %cst_6 = arith.constant -2.500000e-01 : f32
    %19 = vector.broadcast %cst_6 : f32 to vector<16x128xf32>
    %20 = arith.mulf %19, %4 : vector<16x128xf32>
    %21 = arith.mulf %20, %12 : vector<16x128xf32>
    %22 = arith.mulf %21, %18 : vector<16x128xf32>
    %cst_7 = arith.constant 1.000000e+00 : f32
    %23 = vector.broadcast %cst_7 : f32 to vector<16x128xf32>
    %24 = arith.subf %23, %4 : vector<16x128xf32>
    %cst_8 = arith.constant 7.500000e-01 : f32
    %25 = vector.broadcast %cst_8 : f32 to vector<16x128xf32>
    %26 = arith.mulf %25, %24 : vector<16x128xf32>
    %27 = arith.mulf %26, %13 : vector<16x128xf32>
    %28 = arith.mulf %27, %17 : vector<16x128xf32>
    %29 = arith.subf %22, %28 : vector<16x128xf32>
    %c0_9 = arith.constant 0 : index
    %c0_10 = arith.constant 0 : index
    %30 = vector.load %arg4[%c0_9, %c0_10] : memref<8x128xf32, #tpu.memory_space<vmem>>, vector<8x128xf32>
    %31 = vector.shape_cast %29 : vector<16x128xf32> to vector<2x8x128xf32>
    %cst_11 = arith.constant dense<0.000000e+00> : vector<8x128xf32>
    %32 = vector.multi_reduction <add>, %31, %cst_11 [0] : vector<2x8x128xf32> to vector<8x128xf32>
    %33 = arith.addf %30, %32 : vector<8x128xf32>
    %c0_12 = arith.constant 0 : index
    %c0_13 = arith.constant 0 : index
    %34 = vector.load %arg4[%c0_12, %c0_13] : memref<8x128xf32, #tpu.memory_space<vmem>>, vector<8x128xf32>
    tpu.vector_store %arg4[%c0_12, %c0_13], %33 {strides = array<i32>} : memref<8x128xf32, #tpu.memory_space<vmem>>, vector<8x128xf32>,
    return
  }
  func.func @transform_0(%arg0: i32, %arg1: i32) -> (i32, i32) {
    %c1_i32 = arith.constant 1 : i32
    %0 = arith.muli %arg0, %c1_i32 : i32
    %1 = arith.addi %0, %arg1 : i32
    %c0_i32 = arith.constant 0 : i32
    %2 = arith.minsi %1, %c0_i32 : i32
    %c0_i32_0 = arith.constant 0 : i32
    %c0_i32_1 = arith.constant 0 : i32
    return %2, %c0_i32_0 : i32, i32
  }
  func.func @transform_1(%arg0: i32, %arg1: i32) -> (i32, i32) {
    %c1_i32 = arith.constant 1 : i32
    %0 = arith.muli %arg0, %c1_i32 : i32
    %1 = arith.addi %0, %arg1 : i32
    %c0_i32 = arith.constant 0 : i32
    %2 = arith.minsi %1, %c0_i32 : i32
    %c0_i32_0 = arith.constant 0 : i32
    %c0_i32_1 = arith.constant 0 : i32
    return %2, %c0_i32_0 : i32, i32
  }
  func.func @transform_2(%arg0: i32, %arg1: i32) -> (i32, i32) {
    %c0_i32 = arith.constant 0 : i32
    %c0_i32_0 = arith.constant 0 : i32
    return %arg0, %c0_i32 : i32, i32
  }
}

</mosaic_0001>

<bundles_post_ra>
// kernel: tpu_custom_call.1
= control target key start
LH: loop header
LB: loop body
LE: loop exit
PB: predicated region body
PF: predicated region fallthrough
CT: control target
= control target key end

     0   :  { %7 = vsyncpa [#allocation3], 0  ;;  %s297_s0 = inlined_call_operand.hbm [shape: f32[16,128], index: 0, kind: input, shape index: {}]   ;;  %s298_s1 = inlined_call_operand.hbm [shape: f32[16,128], index: 1, kind: input, shape index: {}]   ;;  %s299_s2 = inlined_call_operand.hbm [shape: f32[8,128], index: 2, kind: output, shape index: {}]  }
   0x1   :  { %8 = vsyncpa [#allocation6], 0 }
   0x2   :  { %9 = vsyncpa [#allocation4], 0  ;;  %s241_s9 = smov [#allocation2]   ;;  %s169_s13 = scalar_lea.hbm %s297_s0, 256 }
   0x3   :  { %s21_s10 = sshll.u32 %s241_s9, 4  ;;  %p170_p0 = scmp.ne.s32.totalorder %s297_s0, %s169_s13  ;;  %s22_s10 = int_to_ptr.vmem [resolvable:$true] %s21_s10 }
   0x4   :  { %p173_p1 = scmp.lt.u32.totalorder %s169_s13, %s297_s0 }
   0x6   :  { %p175_p2 = pnand %p173_p1, %p170_p0 }
   0x8   :  { %178 = shalt.err (!%p175_p2)
}
   0x9   :  { %s179_s18 = scalar_lea.vmem %s22_s10, 256  ;;  %p184_p4 = scmp.lt.s32.totalorder %s22_s10, %s22_s10 }
   0xa   :  { %p180_p3 = scmp.ne.s32.totalorder %s22_s10, %s179_s18  ;;  %p185_p5 = scmp.lt.s32.totalorder %s179_s18, %s179_s18 }
   0xc   :  { %p186_p6 = por %p185_p5, %p184_p4 }
   0xe   :  { %p187_p7 = pnand %p186_p6, %p180_p3 }
  0x10   :  { %190 = shalt.err (!%p187_p7)
}
  0x11   :  { %s242_s19 = smov 128   ;;  %s243_s20 = smov 8  }
  0x12   :  { %27 = dma.hbm_to_vmem [thread:$0]  %s297_s0, 256, %s22_s10, [#allocation3], %s242_s19, %s242_s19, %s243_s20  }
  0x13   :  { %s244_s23 = smov [#allocation5]   ;;  %s191_s27 = scalar_lea.hbm %s298_s1, 256 }
  0x14   :  { %s39_s24 = sshll.u32 %s244_s23, 4  ;;  %p192_p8 = scmp.ne.s32.totalorder %s298_s1, %s191_s27  ;;  %s40_s24 = int_to_ptr.vmem [resolvable:$true] %s39_s24 }
  0x15   :  { %p195_p9 = scmp.lt.u32.totalorder %s191_s27, %s298_s1 }
  0x17   :  { %p197_p10 = pnand %p195_p9, %p192_p8 }
  0x19   :  { %200 = shalt.err (!%p197_p10)
}
  0x1a   :  { %s201_s4 = scalar_lea.vmem %s40_s24, 256  ;;  %p206_p12 = scmp.lt.s32.totalorder %s40_s24, %s40_s24 }
  0x1b   :  { %p202_p11 = scmp.ne.s32.totalorder %s40_s24, %s201_s4  ;;  %p207_p13 = scmp.lt.s32.totalorder %s201_s4, %s201_s4 }
  0x1d   :  { %p208_p0 = por %p207_p13, %p206_p12 }
  0x1f   :  { %p209_p1 = pnand %p208_p0, %p202_p11 }
  0x21   :  { %212 = shalt.err (!%p209_p1)
}
  0x22   :  { %45 = dma.hbm_to_vmem [thread:$0]  %s298_s1, 256, %s40_s24, [#allocation6], %s242_s19, %s242_s19, %s243_s20  }
  0x23   :  { %235 = dma.done.wait [#allocation3], 256  }
  0x24   :  { %236 = vsyncadd [#allocation3], 4294967040 }
  0x25   :  { %237 = dma.done.wait [#allocation6], 256  }
  0x26   :  { %238 = vsyncadd [#allocation6], 4294967040  ;;  %v65_v0 = vld [vmem:[#allocation2] sm:$0xff]  ;;  %v66_v1 = vld [vmem:[#allocation2 + $0x8] sm:$0xff]  ;;  %s245_s1 = smov [#allocation7]  }
  0x27   :  { %v69_v2 = vand.u32 2147483647, %v65_v0  ;;  %v70_v3 = vand.u32 2147483647, %v66_v1  ;;  %v77_v20 = vmin.f32 %v65_v0, 0.0  ;;  %v78_v23 = vmin.f32 %v66_v1, 0.0 }
  0x28   :  { %v67_v30 = vld [vmem:[#allocation5] sm:$0xff]  ;;  %v68_v32 = vld [vmem:[#allocation5 + $0x8] sm:$0xff]  ;;  %s137_s6 = sshll.u32 %s245_s1, 4  ;;  %s138_s6 = int_to_ptr.vmem [resolvable:$true] %s137_s6 }
  0x29   :  { %v71_v4 = vsub.f32 0.0, %v69_v2  ;;  %v72_v5 = vsub.f32 0.0, %v70_v3  ;;  %v117_v34 = vsub.f32 1.0, %v67_v30  ;;  %v118_v35 = vsub.f32 1.0, %v68_v32  ;;  %s213_s7 = scalar_lea.vmem %s138_s6, 128  ;;  %p218_p3 = scmp.lt.s32.totalorder %s138_s6, %s138_s6 }
  0x2a   :  { %v111_v40 = vmul.f32 -0.25, %v67_v30  ;;  %v112_v41 = vmul.f32 -0.25, %v68_v32  ;;  %p214_p2 = scmp.ne.s32.totalorder %s138_s6, %s213_s7  ;;  %p219_p4 = scmp.lt.s32.totalorder %s213_s7, %s213_s7 }
  0x2b   :  { %v73_v6 = vmul.f32 1.442695, %v71_v4  ;;  %v75_v7 = vmul.f32 1.442695, %v72_v5  ;;  %v119_v37 = vmul.f32 0.75, %v117_v34  ;;  %v120_v39 = vmul.f32 0.75, %v118_v35 }
  0x2c   :  { %p220_p5 = por %p219_p4, %p218_p3 }
  0x2d   :  { %157 = vpow2.f32 %v73_v6 }
  0x2e   :  { %159 = vpow2.f32 %v75_v7  ;;  %p221_p6 = pnand %p220_p5, %p214_p2 }
  0x37   :  { %v158_v8 = vpop.eup %157 }
  0x38   :  { %v160_v9 = vpop.eup %159  ;;  %v79_v10 = vadd.f32 1.0, %v158_v8  ;;  %v82_v12 = vmul.f32 -0.5, %v158_v8  ;;  %v85_v15 = vand.u32 2147483647, %v158_v8 }
  0x39   :  { %v88_v11 = vadd.f32 1.0, %v160_v9  ;;  %v91_v13 = vmul.f32 -0.5, %v160_v9  ;;  %v94_v17 = vand.u32 2147483647, %v160_v9 }
  0x3a   :  { %161 = vlog2.f32 %v79_v10  ;;  %v83_v14 = vadd.f32 1.0, %v82_v12  ;;  %vm86_vm0 = vcmp.lt.f32.partialorder %v85_v15, 0.0004427343 }
  0x3b   :  { %163 = vlog2.f32 %v88_v11  ;;  %v92_v16 = vadd.f32 1.0, %v91_v13  ;;  %vm95_vm1 = vcmp.lt.f32.partialorder %v94_v17, 0.0004427343 }
  0x3c   :  { %v84_v18 = vmul.f32 %v158_v8, %v83_v14 }
  0x3d   :  { %v93_v21 = vmul.f32 %v160_v9, %v92_v16 }
  0x44   :  { %v162_v19 = vpop.eup %161 }
  0x45   :  { %v164_v22 = vpop.eup %163  ;;  %v81_v24 = vmul.f32 0.6931472, %v162_v19 }
  0x46   :  { %v90_v25 = vmul.f32 0.6931472, %v164_v22 }
  0x47   :  { %v87_v26 = vsel %vm86_vm0, %v84_v18, %v81_v24 }
  0x48   :  { %v96_v27 = vsel %vm95_vm1, %v93_v21, %v90_v25  ;;  %v97_v28 = vsub.f32 %v77_v20, %v87_v26 }
  0x49   :  { %v98_v29 = vsub.f32 %v78_v23, %v96_v27 }
  0x4a   :  { %v101_v31 = vmul.f32 1.442695, %v97_v28  ;;  %v99_v36 = vsub.f32 %v97_v28, %v65_v0  ;;  %v113_v48 = vmul.f32 %v111_v40, %v97_v28 }
  0x4b   :  { %v103_v33 = vmul.f32 1.442695, %v98_v29  ;;  %v100_v38 = vsub.f32 %v98_v29, %v66_v1  ;;  %v114_v51 = vmul.f32 %v112_v41, %v98_v29 }
  0x4c   :  { %165 = vpow2.f32 %v101_v31  ;;  %v121_v42 = vmul.f32 %v119_v37, %v99_v36 }
  0x4d   :  { %167 = vpow2.f32 %v103_v33  ;;  %v122_v44 = vmul.f32 %v120_v39, %v100_v38 }
  0x56   :  { %v166_v43 = vpop.eup %165 }
  0x57   :  { %v168_v45 = vpop.eup %167  ;;  %v105_v46 = vsub.f32 1.0, %v166_v43  ;;  %v107_v47 = vmul.f32 %v166_v43, %v166_v43 }
  0x58   :  { %v106_v49 = vsub.f32 1.0, %v168_v45  ;;  %v108_v50 = vmul.f32 %v168_v45, %v168_v45 }
  0x59   :  { %v109_v52 = vmul.f32 %v105_v46, %v105_v46  ;;  %v123_v53 = vmul.f32 %v121_v42, %v107_v47 }
  0x5a   :  { %v110_v54 = vmul.f32 %v106_v49, %v106_v49  ;;  %v124_v55 = vmul.f32 %v122_v44, %v108_v50 }
  0x5b   :  { %v115_v56 = vmul.f32 %v113_v48, %v109_v52 }
  0x5c   :  { %v116_v57 = vmul.f32 %v114_v51, %v110_v54 }
  0x5d   :  { %v125_v58 = vsub.f32 %v115_v56, %v123_v53 }
  0x5e   :  { %v126_v59 = vsub.f32 %v116_v57, %v124_v55 }
  0x60   :  { %v128_v60 = vadd.f32 %v126_v59, %v125_v58 }
  0x62   :  { %130 = vst [vmem:[#allocation7] sm:$0xff] %v128_v60 }
  0x63   :  { %224 = shalt.err (!%p221_p6)
}
  0x64   :  { %s225_s10 = scalar_lea.hbm %s299_s2, 128 }
  0x65   :  { %p226_p7 = scmp.ne.s32.totalorder %s299_s2, %s225_s10  ;;  %p229_p8 = scmp.lt.u32.totalorder %s225_s10, %s299_s2 }
  0x67   :  { %p231_p9 = pnand %p229_p8, %p226_p7 }
  0x69   :  { %234 = shalt.err (!%p231_p9)
}
  0x6a   :  { %140 = dma.vmem_to_hbm [thread:$0]  %s138_s6, 128, %s299_s2, [#allocation4]  }
  0x6b   :  { %239 = dma.done.wait [#allocation4], 128  }
  0x6c   :  { %240 = vsyncadd [#allocation4], 4294967168 }
  0x6d   :  { %144 = vsyncpa [#allocation3], 1 }
  0x6e   :  { %145 = vsyncpa [#allocation6], 1 }
  0x6f   :  { %146 = vsyncpa [#allocation4], 1 }

</bundles_post_ra>
